<compile_context>
chip_gen: v7x
topology: tpu7x:2x2x1
jax: 0.10.0
libtpu: 0.0.40
codegen_flags: <defaults>
</compile_context>

<pallas_src>
import jax
import jax.numpy as jnp
from jax import lax
from jax.experimental import pallas as pl
from jax.experimental.pallas import tpu as pltpu

EPS = 1e-5                     # nn.LayerNorm default
_MAX_TILE_ROWS = 2048
_MIN_ROW_GRID_STEPS = 8        # >= 2x TensorCore count (v7x has 2), with margin
_VMEM_FRACTION = 0.75          # leave >=16 MiB headroom for Mosaic scratch/DMA


def _round_down(a, b):
    return (a // b) * b


def _sublane_multiple(dtype):
    # Sublane packing width: f32 -> 8, bf16 -> 16, int8/fp8 -> 32.
    return max(8, 32 // jnp.dtype(dtype).itemsize)


def _vmem_limit_bytes():
    """Generation-aware VMEM limit (~75% of per-core capacity)."""
    cap = None
    try:
        cap = getattr(pltpu.get_tpu_info(), "vmem_capacity_bytes", None)
    except Exception:
        cap = None
    if not cap:
        cap = 64 * 1024 * 1024          # conservative: v7x per-TC physical
    return int(cap * _VMEM_FRACTION)


def _pick_tile_rows(rows, per_row_bytes, fixed_bytes, sub, vmem_limit):
    """Largest row tile (sublane multiple) fitting the VMEM budget, capped so
    the row grid has enough steps for megacore sharding + pipelining."""
    if rows <= sub:
        return int(rows)                # single full-extent block is legal
    budget = max(vmem_limit - fixed_bytes, sub * per_row_bytes)
    tr = budget // max(per_row_bytes, 1)
    if rows >= _MIN_ROW_GRID_STEPS * sub:
        tr = min(tr, rows // _MIN_ROW_GRID_STEPS)
    tr = min(tr, _MAX_TILE_ROWS, rows)
    tr = max(sub, _round_down(tr, sub))
    return int(tr)


def _pick_tile_n(d_out):
    # Last-dim block must be a multiple of 128 or equal the full extent.
    if d_out % 128 != 0:
        return int(d_out)
    return int(min(d_out, 512))         # multiple of 256: keeps 2x256^2 MXU fed


# ---------------------------------------------------------------------------
# Kernels
# ---------------------------------------------------------------------------

def _layernorm_kernel(x_ref, g_ref, b_ref, o_ref):
    # x_ref: (TILE_ROWS, D)   g_ref/b_ref: (1, D)
    x = x_ref[...].astype(jnp.float32)
    mean = jnp.mean(x, axis=-1, keepdims=True)
    xc = x - mean
    var = jnp.mean(xc * xc, axis=-1, keepdims=True)   # two-pass, nn.LayerNorm form
    inv = lax.rsqrt(var + EPS)                         # EUP slot
    y = xc * inv * g_ref[...].astype(jnp.float32) + b_ref[...].astype(jnp.float32)
    o_ref[...] = y.astype(o_ref.dtype)


def _prenorm_linear_kernel(x_ref, g_ref, b_ref, w_ref, lb_ref, o_ref):
    # Fused LayerNorm + Linear:  o = LN(x) @ W[:, n_tile] + bias[n_tile]
    # x: (TILE_ROWS, D)  g/b: (1, D)  w: (D, TILE_N)  lb: (1, TILE_N)
    x = x_ref[...].astype(jnp.float32)
    mean = jnp.mean(x, axis=-1, keepdims=True)
    xc = x - mean
    var = jnp.mean(xc * xc, axis=-1, keepdims=True)
    inv = lax.rsqrt(var + EPS)
    y = xc * inv * g_ref[...].astype(jnp.float32) + b_ref[...].astype(jnp.float32)
    # MXU is bf16-native on v5e/v6e/v7x; f32 operands would take ~3x passes.
    acc = jnp.dot(y.astype(jnp.bfloat16), w_ref[...].astype(jnp.bfloat16),
                  preferred_element_type=jnp.float32)
    o_ref[...] = (acc + lb_ref[...].astype(jnp.float32)).astype(o_ref.dtype)


# ---------------------------------------------------------------------------
# Wrappers
# ---------------------------------------------------------------------------

def layernorm_pallas(x, gamma, beta, *, tile_rows=None, out_dtype=None):
    """LayerNorm over the last axis of x (any leading shape)."""
    orig_shape = x.shape
    d = orig_shape[-1]
    rows = 1
    for s in orig_shape[:-1]:
        rows *= s
    out_dtype = x.dtype if out_dtype is None else jnp.dtype(out_dtype)

    x2 = x.reshape(rows, d)
    g2 = gamma.reshape(1, d)
    b2 = beta.reshape(1, d)

    vmem_limit = _vmem_limit_bytes()
    sub = _sublane_multiple(x.dtype)
    if tile_rows is None:
        per_row = (2 * d * x.dtype.itemsize          # double-buffered x in
                   + 2 * d * out_dtype.itemsize      # double-buffered out
                   + 8 * d)                          # f32 x / y working set
        fixed = 2 * 2 * d * gamma.dtype.itemsize + (1 << 20)
        tile_rows = _pick_tile_rows(rows, per_row, fixed, sub, vmem_limit)

    grid = (pl.cdiv(rows, tile_rows),)               # ragged last block: no pad
    out = pl.pallas_call(
        _layernorm_kernel,
        out_shape=jax.ShapeDtypeStruct((rows, d), out_dtype),
        grid_spec=pltpu.PrefetchScalarGridSpec(
            num_scalar_prefetch=0,
            grid=grid,
            in_specs=[
                pl.BlockSpec((tile_rows, d), lambda i: (i, 0)),
                pl.BlockSpec((1, d), lambda i: (0, 0)),
                pl.BlockSpec((1, d), lambda i: (0, 0)),
            ],
            out_specs=pl.BlockSpec((tile_rows, d), lambda i: (i, 0)),
        ),
        compiler_params=pltpu.CompilerParams(
            dimension_semantics=("parallel",),
            vmem_limit_bytes=vmem_limit,
        ),
    )(x2, g2, b2)
    return out.reshape(orig_shape[:-1] + (d,))


def prenorm_linear_pallas(x, gamma, beta, w, bias, *, tile_rows=None, tile_n=None):
    """Fused PreNorm for fn = Linear:  LN(x) @ w + bias, single HBM pass."""
    orig_shape = x.shape
    d = orig_shape[-1]
    d_out = w.shape[-1]
    rows = 1
    for s in orig_shape[:-1]:
        rows *= s

    x2 = x.reshape(rows, d)
    g2 = gamma.reshape(1, d)
    b2 = beta.reshape(1, d)
    bias2 = bias.reshape(1, d_out)

    vmem_limit = _vmem_limit_bytes()
    sub = _sublane_multiple(x.dtype)
    if tile_n is None:
        tile_n = _pick_tile_n(d_out)
    if tile_rows is None:
        per_row = (2 * d * x.dtype.itemsize          # double-buffered x in
                   + 2 * tile_n * x.dtype.itemsize   # double-buffered out
                   + 10 * d                          # f32 x/y + bf16 y
                   + 4 * tile_n)                     # f32 accumulator
        fixed = (2 * d * tile_n * w.dtype.itemsize   # double-buffered W block
                 + 2 * tile_n * bias.dtype.itemsize
                 + 2 * 2 * d * gamma.dtype.itemsize
                 + (1 << 20))
        tile_rows = _pick_tile_rows(rows, per_row, fixed, sub, vmem_limit)

    # TODO(synk): for very large `d` (contraction dim), add a k-tile grid axis
    # with an accumulator scratch; here W's (d, tile_n) block is VMEM-resident.
    grid = (pl.cdiv(rows, tile_rows), pl.cdiv(d_out, tile_n))
    out = pl.pallas_call(
        _prenorm_linear_kernel,
        out_shape=jax.ShapeDtypeStruct((rows, d_out), x.dtype),
        grid_spec=pltpu.PrefetchScalarGridSpec(
            num_scalar_prefetch=0,
            grid=grid,
            in_specs=[
                pl.BlockSpec((tile_rows, d), lambda i, j: (i, 0)),
                pl.BlockSpec((1, d), lambda i, j: (0, 0)),
                pl.BlockSpec((1, d), lambda i, j: (0, 0)),
                pl.BlockSpec((d, tile_n), lambda i, j: (0, j)),
                pl.BlockSpec((1, tile_n), lambda i, j: (0, j)),
            ],
            out_specs=pl.BlockSpec((tile_rows, tile_n), lambda i, j: (i, j)),
        ),
        compiler_params=pltpu.CompilerParams(
            dimension_semantics=("parallel", "parallel"),
            vmem_limit_bytes=vmem_limit,
        ),
    )(x2, g2, b2, w, bias2)
    return out.reshape(orig_shape[:-1] + (d_out,))


def prenorm(x, gamma, beta, fn, *, ln_out_dtype=None, **kwargs):
    """Generic PreNorm.forward: fn(LayerNorm(x), **kwargs) for arbitrary fn."""
    # TODO(synk): arbitrary wrapped modules cannot be fused generically; use
    # prenorm_linear_pallas when fn begins with a Linear projection. Pass
    # ln_out_dtype=jnp.bfloat16 to halve the intermediate HBM traffic when fn
    # tolerates it.
    return fn(layernorm_pallas(x, gamma, beta, out_dtype=ln_out_dtype), **kwargs)


if __name__ == "__main__":
    # Small, lane-dense shapes: dim = 128 (unmasked 128-wide vst), rows = 128
    # so the row grid has several steps (megacore + pipeline exercise).
    B, N, D = 2, 64, 128
    key = jax.random.PRNGKey(0)
    kx, kg, kb, kw, kbias = jax.random.split(key, 5)

    x = jax.random.normal(kx, (B, N, D), dtype=jnp.float32)

    # LayerNorm affine params (random to exercise the affine path).
    gamma = 1.0 + 0.1 * jax.random.normal(kg, (D,), dtype=jnp.float32)
    beta = 0.1 * jax.random.normal(kb, (D,), dtype=jnp.float32)

    # Example wrapped `fn`: a small Linear.
    W = jax.random.normal(kw, (D, D), dtype=jnp.float32) * 0.02
    b = jax.random.normal(kbias, (D,), dtype=jnp.float32) * 0.02

    # 1) Fused PreNorm + Linear (single Pallas kernel, bf16 MXU, f32 accumulate).
    out_fused = prenorm_linear_pallas(x, gamma, beta, W, b)
    out_fused = jax.block_until_ready(out_fused)

    # 2) Generic PreNorm path (LN kernel + plain-JAX fn).
    fn = lambda y: jnp.dot(y, W) + b
    out_generic = prenorm(x, gamma, beta, fn)
    out_generic = jax.block_until_ready(out_generic)

    # Pure-JAX reference with nn.LayerNorm semantics.
    mean = jnp.mean(x, axis=-1, keepdims=True)
    var = jnp.mean((x - mean) ** 2, axis=-1, keepdims=True)
    x_ln = (x - mean) / jnp.sqrt(var + EPS) * gamma + beta
    ref = fn(x_ln)

    # Fused path feeds the MXU bf16 operands -> looser tolerance (f32 accum).
    assert jnp.allclose(out_fused, ref, atol=1e-2, rtol=1e-2), "fused mismatch"
    # Generic path is full f32.
    assert jnp.allclose(out_generic, ref, atol=1e-4, rtol=1e-4), "generic mismatch"

    print("KERNEL_OK")
</pallas_src>

<mosaic_0001>
module attributes {stable_mosaic.version = 11 : i64} {
  func.func @_prenorm_linear_kernel(%arg0: i32, %arg1: i32, %arg2: memref<16x128xf32, #tpu.memory_space<vmem>>, %arg3: memref<1x128xf32, #tpu.memory_space<vmem>>, %arg4: memref<1x128xf32, #tpu.memory_space<vmem>>, %arg5: memref<128x128xf32, #tpu.memory_space<vmem>>, %arg6: memref<1x128xf32, #tpu.memory_space<vmem>>, %arg7: memref<16x128xf32, #tpu.memory_space<vmem>>) attributes {dimension_semantics = [#tpu.dimension_semantics<parallel>, #tpu.dimension_semantics<parallel>], iteration_bounds = array<i64: 8, 1>, scalar_prefetch = 0 : i64, scratch_operands = 0 : i64, tpu.core_type = #tpu.core_type<tc>, window_params = [{transform_indices = @transform_0, window_bounds = array<i64: 16, 128>}, {pipeline_mode = #tpu.pipeline_mode<synchronous>, transform_indices = @transform_1, window_bounds = array<i64: 1, 128>}, {pipeline_mode = #tpu.pipeline_mode<synchronous>, transform_indices = @transform_2, window_bounds = array<i64: 1, 128>}, {transform_indices = @transform_3, window_bounds = array<i64: 128, 128>}, {transform_indices = @transform_4, window_bounds = array<i64: 1, 128>}, {transform_indices = @transform_5, window_bounds = array<i64: 16, 128>}]} {
    %c0 = arith.constant 0 : index
    %c0_0 = arith.constant 0 : index
    %0 = vector.load %arg2[%c0, %c0_0] : memref<16x128xf32, #tpu.memory_space<vmem>>, vector<16x128xf32>
    %cst = arith.constant dense<0.000000e+00> : vector<16xf32>
    %1 = vector.multi_reduction <add>, %0, %cst [1] : vector<16x128xf32> to vector<16xf32>
    %2 = vector.shape_cast %1 : vector<16xf32> to vector<16x1xf32>
    %cst_1 = arith.constant 1.280000e+02 : f32
    %3 = vector.broadcast %cst_1 : f32 to vector<16x1xf32>
    %4 = arith.divf %2, %3 : vector<16x1xf32>
    %5 = vector.broadcast %4 : vector<16x1xf32> to vector<16x128xf32>
    %6 = arith.subf %0, %5 : vector<16x128xf32>
    %7 = arith.mulf %6, %6 : vector<16x128xf32>
    %cst_2 = arith.constant dense<0.000000e+00> : vector<16xf32>
    %8 = vector.multi_reduction <add>, %7, %cst_2 [1] : vector<16x128xf32> to vector<16xf32>
    %9 = vector.shape_cast %8 : vector<16xf32> to vector<16x1xf32>
    %cst_3 = arith.constant 1.280000e+02 : f32
    %10 = vector.broadcast %cst_3 : f32 to vector<16x1xf32>
    %11 = arith.divf %9, %10 : vector<16x1xf32>
    %cst_4 = arith.constant 9.99999974E-6 : f32
    %12 = vector.broadcast %cst_4 : f32 to vector<16x1xf32>
    %13 = arith.addf %11, %12 : vector<16x1xf32>
    %14 = math.rsqrt %13 : vector<16x1xf32>
    %15 = vector.broadcast %14 : vector<16x1xf32> to vector<16x128xf32>
    %16 = arith.mulf %6, %15 : vector<16x128xf32>
    %c0_5 = arith.constant 0 : index
    %c0_6 = arith.constant 0 : index
    %17 = vector.load %arg3[%c0_5, %c0_6] : memref<1x128xf32, #tpu.memory_space<vmem>>, vector<1x128xf32>
    %18 = vector.broadcast %17 : vector<1x128xf32> to vector<16x128xf32>
    %19 = arith.mulf %16, %18 : vector<16x128xf32>
    %c0_7 = arith.constant 0 : index
    %c0_8 = arith.constant 0 : index
    %20 = vector.load %arg4[%c0_7, %c0_8] : memref<1x128xf32, #tpu.memory_space<vmem>>, vector<1x128xf32>
    %21 = vector.broadcast %20 : vector<1x128xf32> to vector<16x128xf32>
    %22 = arith.addf %19, %21 : vector<16x128xf32>
    %23 = arith.truncf %22 : vector<16x128xf32> to vector<16x128xbf16>
    %c0_9 = arith.constant 0 : index
    %c0_10 = arith.constant 0 : index
    %24 = vector.load %arg5[%c0_9, %c0_10] : memref<128x128xf32, #tpu.memory_space<vmem>>, vector<128x128xf32>
    %25 = arith.truncf %24 : vector<128x128xf32> to vector<128x128xbf16>
    %cst_11 = arith.constant dense<0.000000e+00> : vector<16x128xf32>
    %26 = tpu.matmul %23, %25, %cst_11 {dimension_numbers = #tpu.dot_dimension_numbers<[1], [0], [0], [1], [0, 0, 1, 1], [], []>} : vector<16x128xbf16>, vector<128x128xbf16>, vector<16x128xf32> -> vector<16x128xf32>
    %c0_12 = arith.constant 0 : index
    %c0_13 = arith.constant 0 : index
    %27 = vector.load %arg6[%c0_12, %c0_13] : memref<1x128xf32, #tpu.memory_space<vmem>>, vector<1x128xf32>
    %28 = vector.broadcast %27 : vector<1x128xf32> to vector<16x128xf32>
    %29 = arith.addf %26, %28 : vector<16x128xf32>
    %c0_14 = arith.constant 0 : index
    %c0_15 = arith.constant 0 : index
    %30 = vector.load %arg7[%c0_14, %c0_15] : memref<16x128xf32, #tpu.memory_space<vmem>>, vector<16x128xf32>
    tpu.vector_store %arg7[%c0_14, %c0_15], %29 {strides = array<i32>} : memref<16x128xf32, #tpu.memory_space<vmem>>, vector<16x128xf32>,
    return
  }
  func.func @transform_0(%arg0: i32, %arg1: i32) -> (i32, i32) {
    %c0_i32 = arith.constant 0 : i32
    %c0_i32_0 = arith.constant 0 : i32
    return %arg0, %c0_i32 : i32, i32
  }
  func.func @transform_1(%arg0: i32, %arg1: i32) -> (i32, i32) {
    %c0_i32 = arith.constant 0 : i32
    %c0_i32_0 = arith.constant 0 : i32
    %c0_i32_1 = arith.constant 0 : i32
    return %c0_i32, %c0_i32_0 : i32, i32
  }
  func.func @transform_2(%arg0: i32, %arg1: i32) -> (i32, i32) {
    %c0_i32 = arith.constant 0 : i32
    %c0_i32_0 = arith.constant 0 : i32
    %c0_i32_1 = arith.constant 0 : i32
    return %c0_i32, %c0_i32_0 : i32, i32
  }
  func.func @transform_3(%arg0: i32, %arg1: i32) -> (i32, i32) {
    %c0_i32 = arith.constant 0 : i32
    %c0_i32_0 = arith.constant 0 : i32
    return %c0_i32, %arg1 : i32, i32
  }
  func.func @transform_4(%arg0: i32, %arg1: i32) -> (i32, i32) {
    %c0_i32 = arith.constant 0 : i32
    %c0_i32_0 = arith.constant 0 : i32
    return %c0_i32, %arg1 : i32, i32
  }
  func.func @transform_5(%arg0: i32, %arg1: i32) -> (i32, i32) {
    %c0_i32 = arith.constant 0 : i32
    return %arg0, %arg1 : i32, i32
  }
}

</mosaic_0001>

<bundles_post_ra>
// kernel: tpu_custom_call.1
= control target key start
LH: loop header
LB: loop body
LE: loop exit
PB: predicated region body
PF: predicated region fallthrough
CT: control target
= control target key end

     0   :  { %10 = vsyncpa [#allocation3], 0  ;;  %s1092_s0 = inlined_call_operand.hbm [shape: f32[128,128], index: 0, kind: input, shape index: {}]   ;;  %s1093_s1 = inlined_call_operand.vmem [shape: f32[1,128], index: 1, kind: input, shape index: {}]   ;;  %s1094_s2 = inlined_call_operand.vmem [shape: f32[1,128], index: 2, kind: input, shape index: {}]   ;;  %s1095_s3 = inlined_call_operand.hbm [shape: f32[128,128], index: 3, kind: input, shape index: {}]   ;;  %s1096_s4 = inlined_call_operand.vmem [shape: f32[1,128], index: 4, kind: input, shape index: {}]   ;;  %s1097_s5 = inlined_call_operand.hbm [shape: f32[128,128], index: 5, kind: output, shape index: {}]  }
   0x1   :  { %12 = vsyncpa [#allocation3 + $0x1], 0 }
   0x2   :  { %13 = vsyncpa [#allocation6], 0 }
   0x3   :  { %14 = vsyncpa [#allocation4], 0 }
   0x4   :  { %16 = vsyncpa [#allocation4 + $0x1], 0  ;;  %s856_s18 = smov 0   ;;  %s858_s19 = smov 0  }
   0x5   :  { %s860_s20 = smov 0   ;;  %s862_s21 = smov 0  }
   0x6   :  { %s864_s22 = smov 0   ;;  %s866_s23 = smov 0  }
   0x7 LB: > { %s536_s24 = sadd.s32 4294967295, %s815_s23   ;;  %s537_s25 = sadd.s32 4294967294, %s815_s23   ;;  %s815_s23 = sphi %s866_s23, %s22_s23   ;;  %s811_s22 = sphi %s864_s22, %s1122_s22   ;;  %s807_s21 = sphi %s862_s21, %s1121_s21   ;;  %s803_s20 = sphi %s860_s20, %s1120_s20   ;;  %s799_s19 = sphi %s858_s19, %s1119_s19   ;;  %s795_s18 = sphi %s856_s18, %s1118_s18  }
   0x8   : > { %p54_p0 = scmp.ne.s32.totalorder %s799_s19, %s795_s18  ;;  %p890_p1 = scmp.eq.s32.totalorder %s536_s24, 0 }
   0x9   : > { %p894_p2 = scmp.eq.s32.totalorder %s536_s24, 7  ;;  %p180_p3 = scmp.eq.s32.totalorder %s537_s25, 7 }
   0xa   : > { %s1103_s26 = scalar_select %p890_p1, 1, 0 }
   0xb   : > { %s1104_s27 = scalar_select %p894_p2, 1, 0 }
   0xc   : > { %p900_p4 = por %p890_p1, %p54_p0  ;;  %p538_p5 = scmp.ge.s32.totalorder %s815_s23, 1 }
   0xd   : > { %p905_p6 = por %p180_p3, %p54_p0  ;;  %p187_p7 = scmp.lt.s32.totalorder %s815_s23, 9 }
   0xe   : > { %s1105_s28 = scalar_select %p900_p4, 1, 0 }
   0xf   : > { %s1106_s29 = scalar_select %p905_p6, 1, 0 }
  0x10   : > { %p910_p8 = pnand %p538_p5, %p187_p7  ;;  %s817_s6 = smov [#allocation5]  }
  0x11   : > { %s207_s7 = sshll.u32 %s817_s6, 4  ;;  %s34_s9 = sadd.s32 1, %s811_s22  ;;  %s208_s7 = int_to_ptr.vmem [resolvable:$true] %s207_s7 }
  0x12   : > { %s1107_s30 = scalar_select %p910_p8, 1, 0 }
  0x13   : > { %p596_p9 = pneg %p910_p8  ;;  %s671_s12 = scalar_lea.hbm %s1095_s3, 2048 }
  0x14   : > { %p672_p11 = scmp.ne.s32.totalorder %s1095_s3, %s671_s12  ;;  %p678_p3 = scmp.lt.u32.totalorder %s671_s12, %s1095_s3 }
  0x15   : > { %p918_p10 = pnand %p596_p9, %p890_p1 }
  0x17   : > { %p673_p12 = pneg %p918_p10 }
  0x19   : > { %p674_p13 = pnand %p673_p12, %p672_p11 }
  0x1b   : > { %p675_p0 = pneg %p674_p13 }
  0x1d   : > { %p680_p5 = pnand %p678_p3, %p675_p0 }
  0x1f   : > { %683 = shalt.err (!%p680_p5)
}
  0x20   : > { %s684_s17 = scalar_lea.vmem %s208_s7, 2048  ;;  %p692_p1 = scmp.lt.s32.totalorder %s208_s7, %s208_s7 }
  0x21   : > { %p685_p7 = scmp.ne.s32.totalorder %s208_s7, %s684_s17  ;;  %p693_p4 = scmp.lt.s32.totalorder %s684_s17, %s684_s17 }
  0x23   : > { %p687_p9 = pnand %p685_p7, %p673_p12  ;;  %p694_p8 = por %p693_p4, %p692_p1 }
  0x25   : > { %p688_p6 = pneg %p687_p9 }
  0x27   : > { %p695_p2 = pnand %p694_p8, %p688_p6 }
  0x29   : > { %698 = shalt.err (!%p695_p2)
}
  0x2a   : > { %s1102_s24 = smov 128   ;;  %s819_s25 = smov 8  }
  0x2b   : > { %599 = dma.hbm_to_vmem [thread:$0]  (!%p918_p10), %s1095_s3, 2048, %s208_s7, [#allocation6], %s1102_s24, %s1102_s24, %s819_s25  }
  0x2c   : > { %p36_p1 = scmp.ge.s32.totalorder %s34_s9, 8  ;;  %s41_s11 = sadd.s32 1, %s803_s20 }
  0x2d   : > { %p48_p2 = scmp.ne.s32.totalorder %s803_s20, %s799_s19  ;;  %p49_p4 = scmp.eq.s32.totalorder %s815_s23, 0 }
  0x2e   : > { %s1124_s9 = smov (%p36_p1, %s34_s9), 0  ;;  %p1110_p8 = scmp.ne.s32.totalorder %s1104_s27, 0 }
  0x2f   : > { %p948_p6 = por %p49_p4, %p48_p2  ;;  %s38_s13 = ssub.s32 %s811_s22, %s1124_s9 }
  0x30   : > { %p954_p11 = por %p1110_p8, %p48_p2  ;;  %p609_p12 = scmp.lt.s32.totalorder %s815_s23, 8 }
  0x31   : > { %p39_p10 = scmp.eq.s32.totalorder %s38_s13, 0  ;;  %s227_s7 = sand.u32 1, %s803_s20  }
  0x32   : > { %s542_s14 = sshll.u32 %s227_s7, 4  ;;  %s557_s16 = sshll.u32 %s811_s22, 8 }
  0x33   : > { %s963_s15 = scalar_select %p39_p10, %s803_s20, %s41_s11  }
  0x34   : > { %s969_s10 = scalar_lea.hbm %s1092_s0, %s557_s16  ;;  %s231_s27 = scalar_lea.vmem [#allocation2], %s542_s14 }
  0x35   : > { %s238_s24 = sshll.u32 %s231_s27, 4  ;;  %p975_p13 = pnand %p609_p12, %p948_p6  ;;  %s971_s24 = int_to_ptr.vmem [resolvable:$true] %s238_s24 }
  0x36   : > { %s979_s11 = scalar_lea.sflag [#allocation3], %s227_s7  ;;  %s699_s17 = scalar_lea.hbm %s969_s10, 256 }
  0x37   : > { %p700_p0 = scmp.ne.s32.totalorder %s969_s10, %s699_s17  ;;  %p701_p3 = pneg %p975_p13 }
  0x38   : > { %s704_s12 = scalar_lea.hbm %s1092_s0, 2048  ;;  %p705_p9 = scmp.lt.u32.totalorder %s969_s10, %s1092_s0 }
  0x39   : > { %p702_p5 = pnand %p701_p3, %p700_p0  ;;  %p706_p1 = scmp.lt.u32.totalorder %s704_s12, %s699_s17 }
  0x3a   : > { %p708_p4 = scmp.lt.u32.totalorder %s699_s17, %s969_s10 }
  0x3b   : > { %p703_p7 = pneg %p702_p5  ;;  %p707_p2 = por %p706_p1, %p705_p9 }
  0x3d   : > { %p709_p6 = por %p708_p4, %p707_p2 }
  0x3f   : > { %p710_p8 = pnand %p709_p6, %p703_p7 }
  0x41   : > { %713 = shalt.err (!%p710_p8)
}
  0x42   : > { %s714_s7 = scalar_lea.vmem %s971_s24, 256  ;;  %s820_s14 = smov [#allocation2]  }
  0x43   : > { %p715_p12 = scmp.ne.s32.totalorder %s971_s24, %s714_s7  ;;  %s719_s16 = sshll.u32 %s820_s14, 4  ;;  %s720_s16 = int_to_ptr.vmem [resolvable:$false] %s719_s16 }
  0x44   : > { %s721_s6 = scalar_lea.vmem %s720_s16, 512  ;;  %p722_p5 = scmp.lt.s32.totalorder %s971_s24, %s720_s16 }
  0x45   : > { %p717_p10 = pnand %p715_p12, %p701_p3  ;;  %p723_p9 = scmp.lt.s32.totalorder %s721_s6, %s714_s7 }
  0x47   : > { %p718_p0 = pneg %p717_p10  ;;  %p724_p1 = por %p723_p9, %p722_p5 }
  0x49   : > { %p725_p2 = pnand %p724_p1, %p718_p0 }
  0x4b   : > { %728 = shalt.err (!%p725_p2)
}
  0x4c   : > { %s1113_s17 = smov 128   ;;  %p1114_p3 = scmp.ne.s32.totalorder %s1107_s30, 0 }
  0x4d   : > { %603 = dma.hbm_to_vmem [thread:$0]  (!%p975_p13), %s969_s10, 256, %s971_s24, %s979_s11, %s1113_s17, %s1113_s17, %s819_s25  }
  0x4e   : > { %250 = sbr.rel (%p1114_p3) target bundleno = 638 (0x27e), region = 40  ;;  %s1013_s12 = sand.u32 (!%p1114_p3), 1, %s799_s19  }
  0x4f   : > { %s546_s27 = sshll.u32 (!%p1114_p3), %s1013_s12, 4  ;;  %s253_s7 = scalar_lea.sflag (!%p1114_p3), [#allocation3], %s1013_s12 }
  0x50   : > { %s256_s13 = scalar_lea.vmem (!%p1114_p3), [#allocation2], %s546_s27  ;;  %p1115_p7 = scmp.ne.s32.totalorder (!%p1114_p3), %s1105_s28, 0 }
  0x55   : > { %782 = dma.done.wait (%p1115_p7), %s253_s7, 256  }
  0x56   : > { %784 = vsyncadd (%p1115_p7), %s253_s7, 4294967040  ;;  %p1116_p13 = scmp.ne.s32.totalorder %s1103_s26, 0 }
  0x58   : > { %786 = dma.done.wait (%p1116_p13), [#allocation6], 2048  }
  0x59   : > { %788 = vsyncadd (%p1116_p13), [#allocation6], 4294965248  ;;  %v296_v0 = vld [vmem:[%s256_s13] sm:$0xff]  ;;  %v297_v1 = vld [vmem:[%s256_s13 + $0x8] sm:$0xff]  ;;  %v821_v4 = vmov 0.0   ;;  %vm822_vm0 = vmmov 0  }
  0x5a   : > { %298 = vadd.xlane.f32.xlu0 %v296_v0  ;;  %v340_v2 = vld [vmem:[#allocation5] sm:$0xff]  ;;  %v341_v3 = vld [vmem:[#allocation5 + $0x8] sm:$0xff]  ;;  %568 = vmatprep.subr.bf16.mxu0 %v821_v4  ;;  %v342_v14 = vld [vmem:[#allocation5 + $0x10] sm:$0xff]  ;;  %s289_s11 = scalar_lea.vmem [#allocation7], %s546_s27  ;;  %s558_s16 = sshll.u32 %s807_s21, 8 }
  0x5b   : > { %v356_v5 = vpack.c.bf16 %v341_v3, %v340_v2  ;;  %v343_v15 = vld [vmem:[#allocation5 + $0x18] sm:$0xff]  ;;  %v344_v17 = vld [vmem:[#allocation5 + $0x20] sm:$0xff]  ;;  %v345_v18 = vld [vmem:[#allocation5 + $0x28] sm:$0xff]  ;;  %584 = vmatprep.mubr.msk.bf16.mxu0 %vm822_vm0, %v821_v4  ;;  %s429_s14 = sshll.u32 %s289_s11, 4  ;;  %s1044_s7 = scalar_lea.hbm %s1097_s5, %s558_s16  ;;  %s1039_s14 = int_to_ptr.vmem [resolvable:$true] %s429_s14 }
  0x5c   : > { %v357_v16 = vpack.c.bf16 %v343_v15, %v342_v14  ;;  %v358_v19 = vpack.c.bf16 %v345_v18, %v344_v17  ;;  %v346_v20 = vld [vmem:[#allocation5 + $0x30] sm:$0xff]  ;;  %v347_v21 = vld [vmem:[#allocation5 + $0x38] sm:$0xff]  ;;  %v348_v23 = vld [vmem:[#allocation5 + $0x40] sm:$0xff]  ;;  %s415_s27 = scalar_lea.sflag [#allocation4], %s1013_s12  ;;  %s729_s21 = scalar_lea.vmem %s1039_s14, 256 }
  0x5d   : > { %569 = vmatpush3.bf16.msra.mxu0 %v356_v5  ;;  %v359_v22 = vpack.c.bf16 %v347_v21, %v346_v20  ;;  %v349_v24 = vld [vmem:[#allocation5 + $0x48] sm:$0xff]  ;;  %v350_v26 = vld [vmem:[#allocation5 + $0x50] sm:$0xff]  ;;  %v351_v27 = vld [vmem:[#allocation5 + $0x58] sm:$0xff]  ;;  %p730_p4 = scmp.ne.s32.totalorder %s1039_s14, %s729_s21  ;;  %s823_s13 = smov [#allocation7]  }
  0x5e   : > { %300 = vadd.xlane.f32.xlu0 %v297_v1  ;;  %570 = vmatprep.subr.bf16.mxu0 %v821_v4  ;;  %v360_v25 = vpack.c.bf16 %v349_v24, %v348_v23  ;;  %v361_v28 = vpack.c.bf16 %v351_v27, %v350_v26  ;;  %v352_v29 = vld [vmem:[#allocation5 + $0x60] sm:$0xff]  ;;  %v353_v30 = vld [vmem:[#allocation5 + $0x68] sm:$0xff]  ;;  %v354_v32 = vld [vmem:[#allocation5 + $0x70] sm:$0xff]  ;;  %s733_s26 = sshll.u32 %s823_s13, 4  ;;  %s734_s26 = int_to_ptr.vmem [resolvable:$false] %s733_s26 }
  0x5f   : > { %v362_v31 = vpack.c.bf16 %v353_v30, %v352_v29  ;;  %v355_v33 = vld [vmem:[#allocation5 + $0x78] sm:$0xff]  ;;  %v549_v43 = vld [vmem:[%s1093_s1] ss:$0 sm:$0xff]  ;;  %p731_p6 = pnand %p730_p4, %p954_p11  ;;  %s735_s28 = scalar_lea.vmem %s734_s26, 512 }
  0x60   : > { %v363_v34 = vpack.c.bf16 %v355_v33, %v354_v32  ;;  %v550_v47 = vld [vmem:[%s1094_s2] ss:$0 sm:$0xff]  ;;  %p736_p12 = scmp.lt.s32.totalorder %s1039_s14, %s734_s26  ;;  %p737_p10 = scmp.lt.s32.totalorder %s735_s28, %s729_s21 }
  0x61   : > { %571 = vmatpush3.bf16.msra.mxu0 %v357_v16  ;;  %v551_v52 = vld [vmem:[%s1096_s4] ss:$0 sm:$0xff]  ;;  %p732_p8 = pneg %p731_p6 }
  0x62   : > { %572 = vmatprep.subr.bf16.mxu0 %v821_v4  ;;  %p738_p0 = por %p737_p10, %p736_p12 }
  0x64   : > { %p739_p5 = pnand %p738_p0, %p732_p8 }
  0x65   : > { %573 = vmatpush3.bf16.msra.mxu0 %v358_v19 }
  0x66   : > { %574 = vmatprep.subr.bf16.mxu0 %v821_v4 }
  0x69   : > { %575 = vmatpush3.bf16.msra.mxu0 %v359_v22 }
  0x6a   : > { %576 = vmatprep.subr.bf16.mxu0 %v821_v4 }
  0x6d   : > { %577 = vmatpush3.bf16.msra.mxu0 %v360_v25 }
  0x6e   : > { %578 = vmatprep.subr.bf16.mxu0 %v821_v4 }
  0x71   : > { %579 = vmatpush3.bf16.msra.mxu0 %v361_v28 }
  0x72   : > { %580 = vmatprep.subr.bf16.mxu0 %v821_v4 }
  0x75   : > { %581 = vmatpush3.bf16.msra.mxu0 %v362_v31 }
  0x76   : > { %582 = vmatprep.subr.bf16.mxu0 %v821_v4 }
  0x79   : > { %583 = vmatpush3.bf16.msra.mxu0 %v363_v34 }
  0xe7   : > { %v299_v6 = vpop.xlane.xlu0 %298 }
  0xe8   : > { %v303_v7 = vmul.f32 0.0078125, %v299_v6 }
  0xea   : > { %v305_v8 = vsub.f32 %v296_v0, %v303_v7 }
  0xeb   : > { %v301_v9 = vpop.xlane.xlu0 %300 }
  0xec   : > { %v304_v10 = vmul.f32 0.0078125, %v301_v9  ;;  %v307_v11 = vmul.f32 %v305_v8, %v305_v8 }
  0xee   : > { %v306_v12 = vsub.f32 %v297_v1, %v304_v10  ;;  %309 = vadd.xlane.f32.xlu1 %v307_v11 }
  0xf0   : > { %v308_v13 = vmul.f32 %v306_v12, %v306_v12 }
  0xf2   : > { %311 = vadd.xlane.f32.xlu1 %v308_v13 }
 0x17b   : > { %v310_v35 = vpop.xlane.xlu1 %309 }
 0x17c   : > { %v313_v36 = vmul.f32 0.0078125, %v310_v35 }
 0x17e   : > { %v315_v37 = vadd.f32 1e-05, %v313_v36 }
 0x17f   : > { %v312_v38 = vpop.xlane.xlu1 %311 }
 0x180   : > { %667 = vrsqrt.f32 %v315_v37  ;;  %v314_v39 = vmul.f32 0.0078125, %v312_v38 }
 0x182   : > { %v316_v40 = vadd.f32 1e-05, %v314_v39 }
 0x184   : > { %669 = vrsqrt.f32 %v316_v40 }
 0x18a   : > { %v668_v41 = vpop.eup %667 }
 0x18b   : > { %v319_v42 = vmul.f32 %v668_v41, %v305_v8 }
 0x18d   : > { %v328_v46 = vmul.f32 %v549_v43, %v319_v42 }
 0x18e   : > { %v670_v44 = vpop.eup %669 }
 0x18f   : > { %v320_v45 = vmul.f32 %v670_v44, %v306_v12  ;;  %v337_v49 = vadd.f32 %v550_v47, %v328_v46 }
 0x191   : > { %v329_v48 = vmul.f32 %v549_v43, %v320_v45 }
 0x193   : > { %v338_v50 = vadd.f32 %v550_v47, %v329_v48 }
 0x195   : > { %v339_v51 = vpack.c.bf16 %v338_v50, %v337_v49 }
 0x197   : > { %585 = vmatmul.mubr.bf16.vlgmr.msra.gmra.mrb[0].mxu0 %v339_v51 }
 0x26a   : > { %v405_v53 = vpop.f32.mrb[0].mxu0 }
 0x26b   : > { %v406_v54 = vadd.f32 %v551_v52, %v405_v53  ;;  %v586_v55 = vpop.f32.mrb[1].mxu0 }
 0x26c   : > { %v408_v56 = vpop.f32.mrb[2].mxu0 }
 0x26d   : > { %412 = vst [vmem:[%s289_s11] sm:$0xff] %v406_v54  ;;  %v409_v57 = vadd.f32 %v551_v52, %v408_v56  ;;  %v587_v58 = vpop.f32.mrb[3].mxu0 }
 0x26f   : > { %413 = vst [vmem:[%s289_s11 + $0x8] sm:$0xff] %v409_v57 }
 0x270   : > { %742 = shalt.err (!%p739_p5)
}
 0x271   : > { %s743_s30 = scalar_lea.hbm %s1044_s7, 256  ;;  %s747_s10 = scalar_lea.hbm %s1097_s5, 2048 }
 0x272   : > { %p744_p9 = scmp.ne.s32.totalorder %s1044_s7, %s743_s30  ;;  %p748_p3 = scmp.lt.u32.totalorder %s1044_s7, %s1097_s5 }
 0x273   : > { %p749_p7 = scmp.lt.u32.totalorder %s747_s10, %s743_s30  ;;  %p751_p4 = scmp.lt.u32.totalorder %s743_s30, %s1044_s7 }
 0x274   : > { %p745_p1 = pnand %p744_p9, %p954_p11 }
 0x275   : > { %p750_p13 = por %p749_p7, %p748_p3 }
 0x276   : > { %p746_p2 = pneg %p745_p1 }
 0x277   : > { %p752_p6 = por %p751_p4, %p750_p13 }
 0x279   : > { %p753_p8 = pnand %p752_p6, %p746_p2 }
 0x27b   : > { %756 = shalt.err (!%p753_p8)
}
 0x27c   : > { %s824_s6 = smov 128   ;;  %s825_s17 = smov 8  }
 0x27d   : > { %594 = dma.vmem_to_hbm [thread:$0]  (%p954_p11), %s1039_s14, 256, %s1044_s7, %s415_s27, %s824_s6, %s824_s6, %s825_s17  }
 0x27e PF: > { %p611_p12 = scmp.ge.s32.totalorder %s815_s23, 2  ;;  %s444_s21 = sand.u32 1, %s795_s18  }
 0x27f   : > { %p1117_p10 = scmp.ne.s32.totalorder %s1106_s29, 0  ;;  %s445_s13 = scalar_lea.sflag [#allocation4], %s444_s21 }
 0x281   : > { %p605_p0 = pnand %p611_p12, %p1117_p10 }
 0x283   : > { %790 = dma.done.wait (!%p605_p0), %s445_s13, 256  }
 0x284   : > { %792 = vsyncadd (!%p605_p0), %s445_s13, 4294967040  ;;  %s22_s23 = sadd.s32 1, %s815_s23   ;;  %s1118_s18 = smov %s799_s19 }
 0x285   : > { %p19_p5 = scmp.ge.s32.totalorder %s22_s23, 10   ;;  %s1119_s19 = smov %s803_s20 }
 0x286   : > { %s1120_s20 = smov %s963_s15  ;;  %s1121_s21 = smov %s811_s22 }
 0x287   : > { %s1122_s22 = smov %s1124_s9  ;;  %21 = sbr.rel (!%p19_p5) target bundleno = 7 (0x7), region = 93 }
 0x28e   :  { %450 = vsyncpa [#allocation3], 1 }
 0x28f   :  { %452 = vsyncpa [#allocation3 + $0x1], 1 }
 0x290   :  { %453 = vsyncpa [#allocation6], 1 }
 0x291   :  { %454 = vsyncpa [#allocation4], 1 }
 0x292   :  { %456 = vsyncpa [#allocation4 + $0x1], 1 }

</bundles_post_ra>
